<compile_context>
chip_gen: v7x
topology: tpu7x:2x2x1
jax: 0.10.0
libtpu: 0.0.40
codegen_flags: <defaults>
</compile_context>

<pallas_src>
import functools

import jax
import jax.numpy as jnp
from jax.experimental import pallas as pl
from jax.experimental.pallas import tpu as pltpu

LANES = 128
ROW_ALIGN = 32  # covers (8,128)/(16,128)/(32,128) sublane tiling for f32/bf16/int8


def _focal_loss_kernel(x_ref, t_ref, o_ref, acc_ref, *,
                       blocks_per_core, last_data_block, tail_count):
    core = pl.program_id(0)
    step = pl.program_id(1)
    block_rows = x_ref.shape[0]                 # static block shape
    block_elems = block_rows * LANES
    global_block = core * blocks_per_core + step

    @pl.when(step == 0)
    def _():
        acc_ref[...] = jnp.zeros_like(acc_ref)

    x = x_ref[...].astype(jnp.float32)          # logits (upcast in-kernel)
    t = t_ref[...].astype(jnp.float32)          # targets in [0, 1]

    # Elementwise BCE on sigmoid(x):
    #   -[t*log(sigmoid(x)) + (1-t)*log(1-sigmoid(x))] = softplus(x) - t*x
    # (numerically stable form of torch.sigmoid + F.binary_cross_entropy)
    softplus_x = jnp.maximum(x, 0.0) + jnp.log1p(jnp.exp(-jnp.abs(x)))
    bce = softplus_x - t * x

    def _fold(v):
        # Per-(sublane, lane) accumulation: pure VALU adds in the hot loop,
        # no cross-lane reduce until the wrapper epilogue.
        return v.reshape(block_rows // 8, 8, LANES).sum(axis=0)

    if tail_count == block_elems:
        # No ragged tail anywhere: every data block is dense, no mask needed.
        @pl.when(global_block <= last_data_block)
        def _():
            acc_ref[...] += _fold(bce)
    else:
        # Dense data blocks: mask-free hot path.
        @pl.when(global_block < last_data_block)
        def _():
            acc_ref[...] += _fold(bce)

        # Only the single tail block pays for the iota + select.  `tail_count`
        # is a static per-block local count, so no int32 flat-index overflow
        # and no per-step integer multiplies; jnp.where is a select, so
        # garbage/NaN in the padded / OOB tail region cannot propagate.
        @pl.when(global_block == last_data_block)
        def _():
            row_ids = jax.lax.broadcasted_iota(jnp.int32, (block_rows, LANES), 0)
            col_ids = jax.lax.broadcasted_iota(jnp.int32, (block_rows, LANES), 1)
            local_idx = row_ids * LANES + col_ids
            acc_ref[...] += _fold(jnp.where(local_idx < tail_count, bce, 0.0))

    # Blocks past the data (only possible when num_blocks is odd on the
    # 2-core split) contribute nothing.

    @pl.when(step == pl.num_programs(1) - 1)
    def _():
        # Lane-dense (8,128) per-core partial sum; reduce + focal transform
        # happen in the JAX wrapper.
        o_ref[...] = acc_ref[...]


def focal_loss(inputs, targets, alpha=0.8, gamma=0.2, smooth=1, *,
               block_rows=4096, num_cores=2):
    """Pallas TPU implementation of FocalLoss.forward. Returns a scalar (f32).

    Inputs/targets are streamed in their native dtype (pass bf16 logits and
    int8/bool binary targets for maximum HBM bandwidth); math is f32 in-kernel.
    """
    del smooth  # unused, matches the reference module
    x = jnp.ravel(inputs)
    t = jnp.ravel(targets)
    if x.dtype == jnp.bool_:
        x = x.astype(jnp.int8)
    if t.dtype == jnp.bool_:
        t = t.astype(jnp.int8)
    total = x.shape[0]

    # Pad only to a ROW_ALIGN*LANES element boundary (<= 4095 extra elements),
    # not to a full block tile; tail handling is done in-kernel.
    align = ROW_ALIGN * LANES
    padded = ((total + align - 1) // align) * align
    pad = padded - total
    if pad:
        x = jnp.pad(x, (0, pad))
        t = jnp.pad(t, (0, pad))
    rows = padded // LANES                       # multiple of 32

    x2 = x.reshape(rows, LANES)
    t2 = t.reshape(rows, LANES)

    # block_rows: multiple of 32 (keeps bf16/int8 sublane tiling legal),
    # capped by the (32-aligned) row count.
    block_rows = max(32, (block_rows // 32) * 32)
    block_rows = min(block_rows, rows)
    num_blocks = pl.cdiv(rows, block_rows)

    # 2-TensorCore split on v7x; the size-<=2 leading axis runs sequentially
    # (negligible overhead) on single-core v5e/v6e.
    num_cores = max(1, min(num_cores, num_blocks))
    blocks_per_core = pl.cdiv(num_blocks, num_cores)

    block_elems = block_rows * LANES
    last_data_block = (total - 1) // block_elems      # static
    tail_count = total - last_data_block * block_elems  # static, in (0, block_elems]

    if num_cores * blocks_per_core == num_blocks:
        def in_map(c, i):
            return (c * blocks_per_core + i, 0)
    else:
        # Clamp so the (at most one) extra grid step on the last core never
        # issues an out-of-range DMA; its contribution is skipped in-kernel.
        def in_map(c, i):
            return (jnp.minimum(c * blocks_per_core + i, num_blocks - 1), 0)

    kernel = functools.partial(
        _focal_loss_kernel,
        blocks_per_core=blocks_per_core,
        last_data_block=last_data_block,
        tail_count=tail_count)

    # TODO(synk): if a profile shows exposed DMA at block boundaries on
    # v6e/v7x, sweep pipeline_mode=pl.Buffered(3) on the two input specs.
    partials = pl.pallas_call(
        kernel,
        out_shape=jax.ShapeDtypeStruct((num_cores * 8, LANES), jnp.float32),
        grid_spec=pltpu.PrefetchScalarGridSpec(
            num_scalar_prefetch=0,
            grid=(num_cores, blocks_per_core),
            in_specs=[
                pl.BlockSpec((block_rows, LANES), in_map),
                pl.BlockSpec((block_rows, LANES), in_map),
            ],
            out_specs=pl.BlockSpec((8, LANES), lambda c, i: (c, 0)),
            scratch_shapes=[pltpu.VMEM((8, LANES), jnp.float32)],
        ),
        compiler_params=pltpu.CompilerParams(
            dimension_semantics=("parallel", "arbitrary")),
    )(x2, t2)

    # Tiny epilogue in XLA: single cross-lane/sublane reduce + focal transform.
    bce_mean = jnp.sum(partials) / jnp.float32(total)
    focal = alpha * (1.0 - jnp.exp(-bce_mean)) ** gamma * bce_mean
    return focal.astype(jnp.float32)


def _focal_loss_ref(inputs, targets, alpha=0.8, gamma=0.2):
    p = jax.nn.sigmoid(inputs.astype(jnp.float32)).ravel()
    t = targets.astype(jnp.float32).ravel()
    bce = -jnp.mean(t * jnp.log(p) + (1.0 - t) * jnp.log(1.0 - p))
    return alpha * (1.0 - jnp.exp(-bce)) ** gamma * bce


if __name__ == "__main__":
    key = jax.random.PRNGKey(0)
    k1, k2, k3, k4 = jax.random.split(key, 4)

    # NCHW-shaped logits and binary targets, like a segmentation head output.
    x = jax.random.normal(k1, (2, 4, 16, 16), dtype=jnp.float32)
    y_f32 = (jax.random.uniform(k2, (2, 4, 16, 16)) > 0.5).astype(jnp.float32)
    y_i8 = y_f32.astype(jnp.int8)        # narrow target stream (binary targets)

    loss = focal_loss(x, y_i8)
    jax.block_until_ready(loss)
    ref = _focal_loss_ref(x, y_f32)
    assert jnp.allclose(loss, ref, rtol=1e-5, atol=1e-5), (loss, ref)

    # Second check: non-aligned size with small block_rows to exercise the
    # multi-block / 2-core split and the hoisted ragged-tail mask path.
    x2 = jax.random.normal(k3, (2, 4, 63, 64), dtype=jnp.float32)
    y2_f32 = (jax.random.uniform(k4, (2, 4, 63, 64)) > 0.5).astype(jnp.float32)
    loss2 = focal_loss(x2, y2_f32.astype(jnp.int8), block_rows=64)
    jax.block_until_ready(loss2)
    ref2 = _focal_loss_ref(x2, y2_f32)
    assert jnp.allclose(loss2, ref2, rtol=1e-5, atol=1e-5), (loss2, ref2)

    print("KERNEL_OK")
</pallas_src>

<mosaic_0001>
module attributes {stable_mosaic.version = 11 : i64} {
  func.func @_focal_loss_kernel(%arg0: i32, %arg1: i32, %arg2: memref<32x128xf32, #tpu.memory_space<vmem>>, %arg3: memref<32x128xi8, #tpu.memory_space<vmem>>, %arg4: memref<8x128xf32, #tpu.memory_space<vmem>>, %arg5: memref<8x128xf32, #tpu.memory_space<vmem>>) attributes {dimension_semantics = [#tpu.dimension_semantics<parallel>, #tpu.dimension_semantics<arbitrary>], iteration_bounds = array<i64: 1, 1>, scalar_prefetch = 0 : i64, scratch_operands = 1 : i64, tpu.core_type = #tpu.core_type<tc>, window_params = [{transform_indices = @transform_0, window_bounds = array<i64: 32, 128>}, {transform_indices = @transform_1, window_bounds = array<i64: 32, 128>}, {transform_indices = @transform_2, window_bounds = array<i64: 8, 128>}]} {
    %c1_i32 = arith.constant 1 : i32
    %0 = arith.muli %arg0, %c1_i32 : i32
    %1 = arith.addi %0, %arg1 : i32
    %c0_i32 = arith.constant 0 : i32
    %2 = arith.cmpi eq, %arg1, %c0_i32 : i32
    %3 = arith.extui %2 : i1 to i32
    %c0_i32_0 = arith.constant 0 : i32
    %4 = arith.cmpi ne, %3, %c0_i32_0 : i32
    scf.if %4 {
      %cst_11 = arith.constant 0.000000e+00 : f32
      %27 = vector.broadcast %cst_11 : f32 to vector<8x128xf32>
      %c0_12 = arith.constant 0 : index
      %c0_13 = arith.constant 0 : index
      %28 = vector.load %arg5[%c0_12, %c0_13] : memref<8x128xf32, #tpu.memory_space<vmem>>, vector<8x128xf32>
      tpu.vector_store %arg5[%c0_12, %c0_13], %27 {strides = array<i32>} : memref<8x128xf32, #tpu.memory_space<vmem>>, vector<8x128xf32>,
    } else {
    }
    %c0 = arith.constant 0 : index
    %c0_1 = arith.constant 0 : index
    %5 = vector.load %arg2[%c0, %c0_1] : memref<32x128xf32, #tpu.memory_space<vmem>>, vector<32x128xf32>
    %c0_2 = arith.constant 0 : index
    %c0_3 = arith.constant 0 : index
    %6 = vector.load %arg3[%c0_2, %c0_3] : memref<32x128xi8, #tpu.memory_space<vmem>>, vector<32x128xi8>
    %7 = arith.sitofp %6 : vector<32x128xi8> to vector<32x128xf32>
    %cst = arith.constant 0.000000e+00 : f32
    %8 = vector.broadcast %cst : f32 to vector<32x128xf32>
    %9 = arith.maximumf %5, %8 : vector<32x128xf32>
    %10 = math.absf %5 : vector<32x128xf32>
    %cst_4 = arith.constant 0.000000e+00 : f32
    %11 = vector.broadcast %cst_4 : f32 to vector<32x128xf32>
    %12 = arith.subf %11, %10 : vector<32x128xf32>
    %13 = math.exp %12 : vector<32x128xf32>
    %14 = math.log1p %13 : vector<32x128xf32>
    %15 = arith.addf %9, %14 : vector<32x128xf32>
    %16 = arith.mulf %7, %5 : vector<32x128xf32>
    %17 = arith.subf %15, %16 : vector<32x128xf32>
    %c0_i32_5 = arith.constant 0 : i32
    %18 = arith.cmpi slt, %1, %c0_i32_5 : i32
    %19 = arith.extui %18 : i1 to i32
    %c0_i32_6 = arith.constant 0 : i32
    %20 = arith.cmpi ne, %19, %c0_i32_6 : i32
    scf.if %20 {
      %c0_11 = arith.constant 0 : index
      %c0_12 = arith.constant 0 : index
      %27 = vector.load %arg5[%c0_11, %c0_12] : memref<8x128xf32, #tpu.memory_space<vmem>>, vector<8x128xf32>
      %28 = vector.shape_cast %17 : vector<32x128xf32> to vector<4x8x128xf32>
      %cst_13 = arith.constant dense<0.000000e+00> : vector<8x128xf32>
      %29 = vector.multi_reduction <add>, %28, %cst_13 [0] : vector<4x8x128xf32> to vector<8x128xf32>
      %30 = arith.addf %27, %29 : vector<8x128xf32>
      %c0_14 = arith.constant 0 : index
      %c0_15 = arith.constant 0 : index
      %31 = vector.load %arg5[%c0_14, %c0_15] : memref<8x128xf32, #tpu.memory_space<vmem>>, vector<8x128xf32>
      tpu.vector_store %arg5[%c0_14, %c0_15], %30 {strides = array<i32>} : memref<8x128xf32, #tpu.memory_space<vmem>>, vector<8x128xf32>,
    } else {
    }
    %c0_i32_7 = arith.constant 0 : i32
    %21 = arith.cmpi eq, %1, %c0_i32_7 : i32
    %22 = arith.extui %21 : i1 to i32
    %c0_i32_8 = arith.constant 0 : i32
    %23 = arith.cmpi ne, %22, %c0_i32_8 : i32
    scf.if %23 {
      %27 = tpu.iota {dimensions = array<i32: 0>} : vector<32x128xi32>
      %28 = tpu.iota {dimensions = array<i32: 1>} : vector<32x128xi32>
      %c128_i32 = arith.constant 128 : i32
      %29 = vector.broadcast %c128_i32 : i32 to vector<32x128xi32>
      %30 = arith.muli %27, %29 : vector<32x128xi32>
      %31 = arith.addi %30, %28 : vector<32x128xi32>
      %c0_11 = arith.constant 0 : index
      %c0_12 = arith.constant 0 : index
      %32 = vector.load %arg5[%c0_11, %c0_12] : memref<8x128xf32, #tpu.memory_space<vmem>>, vector<8x128xf32>
      %c2048_i32 = arith.constant 2048 : i32
      %33 = vector.broadcast %c2048_i32 : i32 to vector<32x128xi32>
      %34 = arith.cmpi slt, %31, %33 : vector<32x128xi32>
      %cst_13 = arith.constant 0.000000e+00 : f32
      %35 = vector.broadcast %cst_13 : f32 to vector<32x128xf32>
      %36 = arith.select %34, %17, %35 : vector<32x128xi1>, vector<32x128xf32>
      %37 = vector.shape_cast %36 : vector<32x128xf32> to vector<4x8x128xf32>
      %cst_14 = arith.constant dense<0.000000e+00> : vector<8x128xf32>
      %38 = vector.multi_reduction <add>, %37, %cst_14 [0] : vector<4x8x128xf32> to vector<8x128xf32>
      %39 = arith.addf %32, %38 : vector<8x128xf32>
      %c0_15 = arith.constant 0 : index
      %c0_16 = arith.constant 0 : index
      %40 = vector.load %arg5[%c0_15, %c0_16] : memref<8x128xf32, #tpu.memory_space<vmem>>, vector<8x128xf32>
      tpu.vector_store %arg5[%c0_15, %c0_16], %39 {strides = array<i32>} : memref<8x128xf32, #tpu.memory_space<vmem>>, vector<8x128xf32>,
    } else {
    }
    %c0_i32_9 = arith.constant 0 : i32
    %24 = arith.cmpi eq, %arg1, %c0_i32_9 : i32
    %25 = arith.extui %24 : i1 to i32
    %c0_i32_10 = arith.constant 0 : i32
    %26 = arith.cmpi ne, %25, %c0_i32_10 : i32
    scf.if %26 {
      %c0_11 = arith.constant 0 : index
      %c0_12 = arith.constant 0 : index
      %27 = vector.load %arg5[%c0_11, %c0_12] : memref<8x128xf32, #tpu.memory_space<vmem>>, vector<8x128xf32>
      %c0_13 = arith.constant 0 : index
      %c0_14 = arith.constant 0 : index
      %28 = vector.load %arg4[%c0_13, %c0_14] : memref<8x128xf32, #tpu.memory_space<vmem>>, vector<8x128xf32>
      tpu.vector_store %arg4[%c0_13, %c0_14], %27 {strides = array<i32>} : memref<8x128xf32, #tpu.memory_space<vmem>>, vector<8x128xf32>,
    } else {
    }
    return
  }
  func.func @transform_0(%arg0: i32, %arg1: i32) -> (i32, i32) {
    %c1_i32 = arith.constant 1 : i32
    %0 = arith.muli %arg0, %c1_i32 : i32
    %1 = arith.addi %0, %arg1 : i32
    %c0_i32 = arith.constant 0 : i32
    %c0_i32_0 = arith.constant 0 : i32
    return %1, %c0_i32 : i32, i32
  }
  func.func @transform_1(%arg0: i32, %arg1: i32) -> (i32, i32) {
    %c1_i32 = arith.constant 1 : i32
    %0 = arith.muli %arg0, %c1_i32 : i32
    %1 = arith.addi %0, %arg1 : i32
    %c0_i32 = arith.constant 0 : i32
    %c0_i32_0 = arith.constant 0 : i32
    return %1, %c0_i32 : i32, i32
  }
  func.func @transform_2(%arg0: i32, %arg1: i32) -> (i32, i32) {
    %c0_i32 = arith.constant 0 : i32
    %c0_i32_0 = arith.constant 0 : i32
    return %arg0, %c0_i32 : i32, i32
  }
}

</mosaic_0001>

<bundles_post_ra>
// kernel: tpu_custom_call.1
= control target key start
LH: loop header
LB: loop body
LE: loop exit
PB: predicated region body
PF: predicated region fallthrough
CT: control target
= control target key end

     0   :  { %7 = vsyncpa [#allocation4], 0  ;;  %s386_s0 = inlined_call_operand.hbm [shape: f32[32,128], index: 0, kind: input, shape index: {}]   ;;  %s387_s1 = inlined_call_operand.hbm [shape: s8[32,128], index: 1, kind: input, shape index: {}]   ;;  %s388_s2 = inlined_call_operand.hbm [shape: f32[8,128], index: 2, kind: output, shape index: {}]  }
   0x1   :  { %8 = vsyncpa [#allocation7], 0 }
   0x2   :  { %9 = vsyncpa [#allocation5], 0  ;;  %s292_s9 = smov [#allocation3]   ;;  %s220_s13 = scalar_lea.hbm %s386_s0, 512 }
   0x3   :  { %s19_s10 = sshll.u32 %s292_s9, 4  ;;  %p221_p0 = scmp.ne.s32.totalorder %s386_s0, %s220_s13  ;;  %s20_s10 = int_to_ptr.vmem [resolvable:$true] %s19_s10 }
   0x4   :  { %p224_p1 = scmp.lt.u32.totalorder %s220_s13, %s386_s0 }
   0x6   :  { %p226_p2 = pnand %p224_p1, %p221_p0 }
   0x8   :  { %229 = shalt.err (!%p226_p2)
}
   0x9   :  { %s230_s18 = scalar_lea.vmem %s20_s10, 512  ;;  %p235_p4 = scmp.lt.s32.totalorder %s20_s10, %s20_s10 }
   0xa   :  { %p231_p3 = scmp.ne.s32.totalorder %s20_s10, %s230_s18  ;;  %p236_p5 = scmp.lt.s32.totalorder %s230_s18, %s230_s18 }
   0xc   :  { %p237_p6 = por %p236_p5, %p235_p4 }
   0xe   :  { %p238_p7 = pnand %p237_p6, %p231_p3 }
  0x10   :  { %241 = shalt.err (!%p238_p7)
}
  0x11   :  { %s293_s19 = smov 128   ;;  %s294_s20 = smov 8  }
  0x12   :  { %25 = dma.hbm_to_vmem [thread:$0]  %s386_s0, 512, %s20_s10, [#allocation4], %s293_s19, %s293_s19, %s294_s20  }
  0x13   :  { %s295_s23 = smov [#allocation6]   ;;  %s242_s27 = scalar_lea.hbm %s387_s1, 128 }
  0x14   :  { %s35_s24 = sshll.u32 %s295_s23, 4  ;;  %p243_p8 = scmp.ne.s32.totalorder %s387_s1, %s242_s27  ;;  %s36_s24 = int_to_ptr.vmem [resolvable:$true] %s35_s24 }
  0x15   :  { %p246_p9 = scmp.lt.u32.totalorder %s242_s27, %s387_s1 }
  0x17   :  { %p248_p10 = pnand %p246_p9, %p243_p8 }
  0x19   :  { %251 = shalt.err (!%p248_p10)
}
  0x1a   :  { %s252_s4 = scalar_lea.vmem %s36_s24, 128  ;;  %p257_p12 = scmp.lt.s32.totalorder %s36_s24, %s36_s24 }
  0x1b   :  { %p253_p11 = scmp.ne.s32.totalorder %s36_s24, %s252_s4  ;;  %p258_p13 = scmp.lt.s32.totalorder %s252_s4, %s252_s4 }
  0x1d   :  { %p259_p0 = por %p258_p13, %p257_p12 }
  0x1f   :  { %p260_p1 = pnand %p259_p0, %p253_p11 }
  0x21   :  { %263 = shalt.err (!%p260_p1)
}
  0x22   :  { %38 = dma.hbm_to_vmem [thread:$0]  %s387_s1, 128, %s36_s24, [#allocation7]  }
  0x23   :  { %286 = dma.done.wait [#allocation4], 512  }
  0x24   :  { %287 = vsyncadd [#allocation4], 4294966784 }
  0x25   :  { %288 = dma.done.wait [#allocation7], 128  }
  0x26   :  { %289 = vsyncadd [#allocation7], 4294967168  ;;  %v336_v0 = vld [vmem:[#allocation3] sm:$0xff]  ;;  %v338_v1 = vld [vmem:[#allocation3 + $0x8] sm:$0xff]  ;;  %v149_v16 = vlaneseq  ;;  %s296_s1 = smov [#allocation8]  }
  0x27   :  { %v340_v2 = vld [vmem:[#allocation3 + $0x10] sm:$0xff]  ;;  %v342_v3 = vld [vmem:[#allocation3 + $0x18] sm:$0xff]  ;;  %v71_v4 = vand.u32 2147483647, %v336_v0  ;;  %v72_v5 = vand.u32 2147483647, %v338_v1 }
  0x28   :  { %v73_v6 = vand.u32 2147483647, %v340_v2  ;;  %v74_v7 = vand.u32 2147483647, %v342_v3  ;;  %v150_v17 = vshrl.u32 %v149_v16, 7  ;;  %v155_v27 = vand.u32 127, %v149_v16 }
  0x29   :  { %v75_v8 = vsub.f32 0.0, %v71_v4  ;;  %v76_v9 = vsub.f32 0.0, %v72_v5  ;;  %v58_v29 = vld [vmem:[#allocation6] sm:$0xff]  ;;  %v67_v44 = vmax.f32 %v336_v0, 0.0  ;;  %v68_v45 = vmax.f32 %v338_v1, 0.0  ;;  %s189_s6 = sshll.u32 %s296_s1, 4  ;;  %s190_s6 = int_to_ptr.vmem [resolvable:$true] %s189_s6 }
  0x2a   :  { %v77_v10 = vsub.f32 0.0, %v73_v6  ;;  %v78_v11 = vsub.f32 0.0, %v74_v7  ;;  %v151_v23 = vadd.s32 8, %v150_v17  ;;  %v152_v24 = vadd.s32 16, %v150_v17  ;;  %s264_s7 = scalar_lea.vmem %s190_s6, 128  ;;  %p269_p3 = scmp.lt.s32.totalorder %s190_s6, %s190_s6 }
  0x2b   :  { %v79_v12 = vmul.f32 1.442695, %v75_v8  ;;  %v81_v13 = vmul.f32 1.442695, %v76_v9  ;;  %v156_v28 = vmul.u32 128, %v150_v17  ;;  %v153_v31 = vadd.s32 24, %v150_v17  ;;  %p265_p2 = scmp.ne.s32.totalorder %s190_s6, %s264_s7  ;;  %p270_p4 = scmp.lt.s32.totalorder %s264_s7, %s264_s7 }
  0x2c   :  { %v83_v14 = vmul.f32 1.442695, %v77_v10  ;;  %v85_v15 = vmul.f32 1.442695, %v78_v11  ;;  %v157_v35 = vmul.u32 128, %v151_v23  ;;  %v158_v36 = vmul.u32 128, %v152_v24 }
  0x2d   :  { %204 = vpow2.f32 %v79_v12  ;;  %v59_v37 = vunpack.c.0.s8 %v58_v29  ;;  %v60_v38 = vunpack.c.1.s8 %v58_v29  ;;  %v160_v39 = vadd.s32 %v156_v28, %v155_v27  ;;  %p271_p5 = por %p270_p4, %p269_p3 }
  0x2e   :  { %206 = vpow2.f32 %v81_v13  ;;  %v61_v40 = vunpack.c.2.s8 %v58_v29  ;;  %v159_v43 = vmul.u32 128, %v153_v31  ;;  %v62_v48 = vunpack.c.3.s8 %v58_v29 }
  0x2f   :  { %208 = vpow2.f32 %v83_v14  ;;  %v69_v49 = vmax.f32 %v340_v2, 0.0  ;;  %v63_v52 = vcvt.s32.f32 %v59_v37  ;;  %v64_v53 = vcvt.s32.f32 %v60_v38  ;;  %p272_p6 = pnand %p271_p5, %p265_p2 }
  0x30   :  { %210 = vpow2.f32 %v85_v15  ;;  %v161_v55 = vadd.s32 %v157_v35, %v155_v27  ;;  %v65_v56 = vcvt.s32.f32 %v61_v40  ;;  %v70_v57 = vmax.f32 %v342_v3, 0.0 }
  0x31   :  { %v162_v4 = vadd.s32 %v158_v36, %v155_v27  ;;  %v66_v6 = vcvt.s32.f32 %v62_v48  ;;  %v127_v13 = vmul.f32 %v63_v52, %v336_v0  ;;  %v128_v14 = vmul.f32 %v64_v53, %v338_v1 }
  0x32   :  { %vm165_vm4 = vcmp.lt.s32.totalorder %v160_v39, 2048  ;;  %vm166_vm5 = vcmp.lt.s32.totalorder %v161_v55, 2048 }
  0x33   :  { %vm167_vm6 = vcmp.lt.s32.totalorder %v162_v4, 2048 }
  0x37   :  { %v205_v18 = vpop.eup %204 }
  0x38   :  { %v207_v19 = vpop.eup %206  ;;  %v87_v20 = vadd.f32 1.0, %v205_v18  ;;  %v90_v30 = vmul.f32 -0.5, %v205_v18  ;;  %v93_v46 = vand.u32 2147483647, %v205_v18 }
  0x39   :  { %v209_v21 = vpop.eup %208  ;;  %v96_v22 = vadd.f32 1.0, %v207_v19  ;;  %v99_v32 = vmul.f32 -0.5, %v207_v19  ;;  %v102_v50 = vand.u32 2147483647, %v207_v19 }
  0x3a   :  { %v211_v25 = vpop.eup %210  ;;  %212 = vlog2.f32 %v87_v20  ;;  %v105_v26 = vadd.f32 1.0, %v209_v21  ;;  %v108_v34 = vmul.f32 -0.5, %v209_v21  ;;  %v91_v41 = vadd.f32 1.0, %v90_v30 }
  0x3b   :  { %214 = vlog2.f32 %v96_v22  ;;  %v114_v33 = vadd.f32 1.0, %v211_v25  ;;  %v117_v42 = vmul.f32 -0.5, %v211_v25  ;;  %v100_v47 = vadd.f32 1.0, %v99_v32 }
  0x3c   :  { %216 = vlog2.f32 %v105_v26  ;;  %v109_v51 = vadd.f32 1.0, %v108_v34  ;;  %v111_v54 = vand.u32 2147483647, %v209_v21  ;;  %v92_v58 = vmul.f32 %v205_v18, %v91_v41 }
  0x3d   :  { %218 = vlog2.f32 %v114_v33  ;;  %v118_v59 = vadd.f32 1.0, %v117_v42  ;;  %vm352_vm0 = vcmp.lt.f32.partialorder %v93_v46, 0.0004427343  ;;  %v101_v62 = vmul.f32 %v207_v19, %v100_v47 }
  0x3e   :  { %v120_v63 = vand.u32 2147483647, %v211_v25  ;;  %vm356_vm1 = vcmp.lt.f32.partialorder %v102_v50, 0.0004427343  ;;  %v110_v9 = vmul.f32 %v209_v21, %v109_v51  ;;  %vm360_vm2 = vcmp.lt.f32.partialorder %v111_v54, 0.0004427343 }
  0x3f   :  { %v119_v17 = vmul.f32 %v211_v25, %v118_v59  ;;  %v129_v18 = vmul.f32 %v65_v56, %v340_v2  ;;  %v163_v22 = vadd.s32 %v159_v43, %v155_v27  ;;  %v130_v26 = vmul.f32 %v66_v6, %v342_v3 }
  0x40   :  { %vm121_vm3 = vcmp.lt.f32.partialorder %v120_v63, 0.0004427343 }
  0x41   :  { %vm168_vm7 = vcmp.lt.s32.totalorder %v163_v22, 2048 }
  0x44   :  { %v213_v60 = vpop.eup %212 }
  0x45   :  { %v215_v5 = vpop.eup %214  ;;  %v89_v7 = vmul.f32 0.6931472, %v213_v60 }
  0x46   :  { %v217_v10 = vpop.eup %216  ;;  %v98_v11 = vmul.f32 0.6931472, %v215_v5 }
  0x47   :  { %v95_v15 = vsel %vm352_vm0, %v92_v58, %v89_v7  ;;  %v107_v16 = vmul.f32 0.6931472, %v217_v10  ;;  %v219_v19 = vpop.eup %218 }
  0x48   :  { %v104_v20 = vsel %vm356_vm1, %v101_v62, %v98_v11  ;;  %v123_v21 = vadd.f32 %v95_v15, %v67_v44  ;;  %v116_v0 = vmul.f32 0.6931472, %v219_v19 }
  0x49   :  { %v113_v23 = vsel %vm360_vm2, %v110_v9, %v107_v16  ;;  %v124_v24 = vadd.f32 %v104_v20, %v68_v45 }
  0x4a   :  { %v125_v1 = vadd.f32 %v113_v23, %v69_v49  ;;  %v131_v28 = vsub.f32 %v123_v21, %v127_v13  ;;  %v122_v25 = vsel %vm121_vm3, %v119_v17, %v116_v0 }
  0x4b   :  { %v132_v2 = vsub.f32 %v124_v24, %v128_v14  ;;  %v126_v29 = vadd.f32 %v122_v25, %v70_v57 }
  0x4c   :  { %v133_v30 = vsub.f32 %v125_v1, %v129_v18  ;;  %v169_v31 = vsel %vm165_vm4, %v131_v28, 0.0 }
  0x4d   :  { %v170_v32 = vsel %vm166_vm5, %v132_v2, 0.0  ;;  %v134_v27 = vsub.f32 %v126_v29, %v130_v26 }
  0x4e   :  { %v171_v33 = vsel %vm167_vm6, %v133_v30, 0.0  ;;  %v173_v34 = vadd.f32 %v170_v32, %v169_v31 }
  0x4f   :  { %v172_v35 = vsel %vm168_vm7, %v134_v27, 0.0 }
  0x50   :  { %v174_v36 = vadd.f32 %v173_v34, %v171_v33 }
  0x52   :  { %v175_v37 = vadd.f32 %v174_v36, %v172_v35 }
  0x54   :  { %182 = vst [vmem:[#allocation8] sm:$0xff] %v175_v37 }
  0x55   :  { %275 = shalt.err (!%p272_p6)
}
  0x56   :  { %s276_s10 = scalar_lea.hbm %s388_s2, 128 }
  0x57   :  { %p277_p7 = scmp.ne.s32.totalorder %s388_s2, %s276_s10  ;;  %p280_p8 = scmp.lt.u32.totalorder %s276_s10, %s388_s2 }
  0x59   :  { %p282_p9 = pnand %p280_p8, %p277_p7 }
  0x5b   :  { %285 = shalt.err (!%p282_p9)
}
  0x5c   :  { %192 = dma.vmem_to_hbm [thread:$0]  %s190_s6, 128, %s388_s2, [#allocation5]  }
  0x5d   :  { %290 = dma.done.wait [#allocation5], 128  }
  0x5e   :  { %291 = vsyncadd [#allocation5], 4294967168 }
  0x5f   :  { %196 = vsyncpa [#allocation4], 1 }
  0x60   :  { %197 = vsyncpa [#allocation7], 1 }
  0x61   :  { %198 = vsyncpa [#allocation5], 1 }

</bundles_post_ra>
